<compile_context>
chip_gen: v7x
topology: tpu7x:2x2x1
jax: 0.10.0
libtpu: 0.0.40
codegen_flags: <defaults>
</compile_context>

<pallas_src>
import jax
import jax.numpy as jnp
from jax import lax
from jax.experimental import pallas as pl
from jax.experimental.pallas import tpu as pltpu

KH = KW = 3
STRIDE = 2      # conv2 stride (strides[1] in the module); the live branch
PAD = 1
LANES = 128
SUBLANES = 8


def _round_up(x, m):
    return (x + m - 1) // m * m


def _stem_matmul_kernel(w_ref, b_ref, p_ref, o_ref):
    # w_ref: (Cout_p, K)   bf16 conv2 weights with BN scale pre-folded
    # b_ref: (Cout_p, 1)   f32 folded BN bias  = beta - mean * scale
    # p_ref: (K, TM)       bf16 im2col patches (output pixels on the lane axis)
    # o_ref: (Cout_p, TM)
    acc = jnp.dot(w_ref[...], p_ref[...], preferred_element_type=jnp.float32)
    o_ref[...] = jnp.maximum(acc + b_ref[...], 0.0).astype(o_ref.dtype)  # BN bias + ReLU


def _pick_tm(m, k, cout_p, out_itemsize, vmem_budget=24 << 20, tm_cap=4096):
    """Largest TM (multiple of 128) fitting the VMEM budget, with >=2 grid steps."""
    kp = _round_up(k, 16)  # bf16 packs 2 rows / sublane in VMEM

    def step_bytes(tm):
        return (2 * kp * tm * 2                      # patches block, double-buffered
                + 2 * cout_p * tm * out_itemsize     # output block, double-buffered
                + kp * cout_p * 2                    # resident weights (bf16)
                + cout_p * LANES * 4)                # resident bias (f32, lane-padded)

    tm = tm_cap
    while tm > LANES and step_bytes(tm) > vmem_budget:
        tm -= LANES
    # Keep >= 2 grid steps when there is enough work (v7x megacore); for tiny M
    # this collapses to a single 128-row step.
    tm = min(tm, max(LANES, _round_up(pl.cdiv(m, 2), LANES)))
    return tm


def stem_block3_forward(x_nchw, w2, gamma2, beta2, mean2, var2, eps=1e-5):
    """StemBlock3.forward: out = relu(bn2(conv2(x)))."""
    n, cin, h, w = x_nchw.shape
    cout = w2.shape[0]
    oh = (h + 2 * PAD - KH) // STRIDE + 1
    ow = (w + 2 * PAD - KW) // STRIDE + 1
    k = KH * KW * cin
    m = n * oh * ow
    cout_p = _round_up(cout, SUBLANES)
    out_dtype = x_nchw.dtype
    out_itemsize = jnp.dtype(out_dtype).itemsize

    tm = _pick_tm(m, k, cout_p, out_itemsize)
    mp = _round_up(m, tm)

    # --- wrapper-side im2col (one fused XLA pass), bf16 early to halve traffic ---
    x = jnp.transpose(x_nchw, (0, 2, 3, 1)).astype(jnp.bfloat16)          # NHWC
    xp = jnp.pad(x, ((0, 0), (PAD, PAD), (PAD, PAD), (0, 0)))             # pad=1 halo
    taps = []
    for kh in range(KH):
        for kw in range(KW):
            taps.append(xp[:, kh:kh + (oh - 1) * STRIDE + 1:STRIDE,
                             kw:kw + (ow - 1) * STRIDE + 1:STRIDE, :])
    patches = jnp.concatenate(taps, axis=-1).reshape(m, k).T              # (K, M)
    if mp != m:
        patches = jnp.pad(patches, ((0, 0), (0, mp - m)))                 # zero cols, sliced off

    # --- weights with BN scale folded (fold in f32, then cast to bf16) ---
    scale = gamma2.astype(jnp.float32) / jnp.sqrt(var2.astype(jnp.float32) + eps)
    bias = beta2.astype(jnp.float32) - mean2.astype(jnp.float32) * scale
    # OIHW -> (cout, kh, kw, cin) -> (cout, K); K order matches the tap concat above.
    w_mat = jnp.transpose(w2, (0, 2, 3, 1)).reshape(cout, k).astype(jnp.float32)
    w_mat = w_mat * scale[:, None]
    w_mat = jnp.pad(w_mat, ((0, cout_p - cout), (0, 0))).astype(jnp.bfloat16)
    bias = jnp.pad(bias, (0, cout_p - cout)).reshape(cout_p, 1).astype(jnp.float32)

    flops = 2 * cout_p * k * mp
    bytes_accessed = int(patches.size * 2 + w_mat.size * 2 + bias.size * 4
                         + cout_p * mp * out_itemsize)

    out = pl.pallas_call(
        _stem_matmul_kernel,
        out_shape=jax.ShapeDtypeStruct((cout_p, mp), out_dtype),
        grid=(mp // tm,),
        in_specs=[
            pl.BlockSpec((cout_p, k), lambda i: (0, 0)),   # weights (grid-invariant)
            pl.BlockSpec((cout_p, 1), lambda i: (0, 0)),   # bias    (grid-invariant)
            pl.BlockSpec((k, tm), lambda i: (0, i)),       # patches (tiled along M)
        ],
        out_specs=pl.BlockSpec((cout_p, tm), lambda i: (0, i)),
        compiler_params=pltpu.CompilerParams(
            dimension_semantics=("parallel",),
            vmem_limit_bytes=32 * 1024 * 1024),
        cost_estimate=pl.CostEstimate(
            flops=flops, transcendentals=0, bytes_accessed=bytes_accessed),
    )(w_mat, bias, patches)

    # Padded Cout rows are exactly 0 (zero weight & bias); padded M columns are
    # relu(bias) but both are sliced off here.  The transpose touches only the
    # small un-padded (Cout, M) slab.
    out = out[:cout, :m].reshape(cout, n, oh, ow)
    return jnp.transpose(out, (1, 0, 2, 3))                               # NCHW


def _reference(x_nchw, w2, gamma2, beta2, mean2, var2, eps=1e-5):
    y = lax.conv_general_dilated(
        x_nchw.astype(jnp.float32), w2.astype(jnp.float32),
        window_strides=(STRIDE, STRIDE), padding=((PAD, PAD), (PAD, PAD)),
        dimension_numbers=("NCHW", "OIHW", "NCHW"))
    scale = gamma2 / jnp.sqrt(var2 + eps)
    bias = beta2 - mean2 * scale
    y = y * scale[None, :, None, None] + bias[None, :, None, None]
    return jnp.maximum(y, 0.0)


if __name__ == "__main__":
    # Small shapes consistent with StemBlock3(inplanes=4, planes=[8, 8], strides=[1, 2]).
    N, CIN, H, W = 2, 4, 16, 16
    COUT = 8  # planes[1]

    key = jax.random.PRNGKey(0)
    kx, kw1, kw2, kg, kb, km, kv = jax.random.split(key, 7)

    x = jax.random.normal(kx, (N, CIN, H, W), dtype=jnp.float32)

    # conv1/bn1 parameters exist in the module but are dead code in forward().
    _w1 = jax.random.normal(kw1, (COUT, CIN, KH, KW), dtype=jnp.float32) * 0.1

    # conv2 / bn2 parameters (deterministic).
    w2 = jax.random.normal(kw2, (COUT, CIN, KH, KW), dtype=jnp.float32) * 0.1
    gamma2 = 1.0 + 0.1 * jax.random.normal(kg, (COUT,), dtype=jnp.float32)
    beta2 = 0.1 * jax.random.normal(kb, (COUT,), dtype=jnp.float32)
    mean2 = 0.1 * jax.random.normal(km, (COUT,), dtype=jnp.float32)
    var2 = jnp.abs(jax.random.normal(kv, (COUT,), dtype=jnp.float32)) + 0.5

    out = stem_block3_forward(x, w2, gamma2, beta2, mean2, var2)
    out = jax.block_until_ready(out)

    ref = _reference(x, w2, gamma2, beta2, mean2, var2)
    assert out.shape == (N, COUT, H // 2, W // 2), out.shape
    # bf16 matmul operands (f32 accumulation) -> loose tolerance vs f32 reference.
    err = float(jnp.max(jnp.abs(out - ref)))
    assert jnp.allclose(out, ref, atol=5e-2, rtol=5e-2), err

    print("KERNEL_OK")
</pallas_src>

<mosaic_0001>
module attributes {stable_mosaic.version = 11 : i64} {
  func.func @_stem_matmul_kernel(%arg0: i32, %arg1: memref<8x36xbf16, #tpu.memory_space<vmem>>, %arg2: memref<8x1xf32, #tpu.memory_space<vmem>>, %arg3: memref<36x128xbf16, #tpu.memory_space<vmem>>, %arg4: memref<8x128xf32, #tpu.memory_space<vmem>>) attributes {dimension_semantics = [#tpu.dimension_semantics<parallel>], iteration_bounds = array<i64: 1>, scalar_prefetch = 0 : i64, scratch_operands = 0 : i64, tpu.core_type = #tpu.core_type<tc>, window_params = [{pipeline_mode = #tpu.pipeline_mode<synchronous>, transform_indices = @transform_0, window_bounds = array<i64: 8, 36>}, {pipeline_mode = #tpu.pipeline_mode<synchronous>, transform_indices = @transform_1, window_bounds = array<i64: 8, 1>}, {transform_indices = @transform_2, window_bounds = array<i64: 36, 128>}, {transform_indices = @transform_3, window_bounds = array<i64: 8, 128>}]} {
    %c0 = arith.constant 0 : index
    %c0_0 = arith.constant 0 : index
    %0 = vector.load %arg1[%c0, %c0_0] : memref<8x36xbf16, #tpu.memory_space<vmem>>, vector<8x36xbf16>
    %c0_1 = arith.constant 0 : index
    %c0_2 = arith.constant 0 : index
    %1 = vector.load %arg3[%c0_1, %c0_2] : memref<36x128xbf16, #tpu.memory_space<vmem>>, vector<36x128xbf16>
    %cst = arith.constant dense<0.000000e+00> : vector<8x128xf32>
    %2 = tpu.matmul %0, %1, %cst {dimension_numbers = #tpu.dot_dimension_numbers<[1], [0], [0], [1], [0, 0, 1, 1], [], []>} : vector<8x36xbf16>, vector<36x128xbf16>, vector<8x128xf32> -> vector<8x128xf32>
    %c0_3 = arith.constant 0 : index
    %c0_4 = arith.constant 0 : index
    %3 = vector.load %arg2[%c0_3, %c0_4] : memref<8x1xf32, #tpu.memory_space<vmem>>, vector<8x1xf32>
    %4 = vector.broadcast %3 : vector<8x1xf32> to vector<8x128xf32>
    %5 = arith.addf %2, %4 : vector<8x128xf32>
    %cst_5 = arith.constant 0.000000e+00 : f32
    %6 = vector.broadcast %cst_5 : f32 to vector<8x128xf32>
    %7 = arith.maximumf %5, %6 : vector<8x128xf32>
    %c0_6 = arith.constant 0 : index
    %c0_7 = arith.constant 0 : index
    %8 = vector.load %arg4[%c0_6, %c0_7] : memref<8x128xf32, #tpu.memory_space<vmem>>, vector<8x128xf32>
    tpu.vector_store %arg4[%c0_6, %c0_7], %7 {strides = array<i32>} : memref<8x128xf32, #tpu.memory_space<vmem>>, vector<8x128xf32>,
    return
  }
  func.func @transform_0(%arg0: i32) -> (i32, i32) {
    %c0_i32 = arith.constant 0 : i32
    %c0_i32_0 = arith.constant 0 : i32
    %c0_i32_1 = arith.constant 0 : i32
    return %c0_i32, %c0_i32_0 : i32, i32
  }
  func.func @transform_1(%arg0: i32) -> (i32, i32) {
    %c0_i32 = arith.constant 0 : i32
    %c0_i32_0 = arith.constant 0 : i32
    %c0_i32_1 = arith.constant 0 : i32
    return %c0_i32, %c0_i32_0 : i32, i32
  }
  func.func @transform_2(%arg0: i32) -> (i32, i32) {
    %c0_i32 = arith.constant 0 : i32
    %c0_i32_0 = arith.constant 0 : i32
    return %c0_i32, %arg0 : i32, i32
  }
  func.func @transform_3(%arg0: i32) -> (i32, i32) {
    %c0_i32 = arith.constant 0 : i32
    %c0_i32_0 = arith.constant 0 : i32
    return %c0_i32, %arg0 : i32, i32
  }
}

</mosaic_0001>

<bundles_post_ra>
// kernel: tpu_custom_call.1
= control target key start
LH: loop header
LB: loop body
LE: loop exit
PB: predicated region body
PF: predicated region fallthrough
CT: control target
= control target key end

     0   :  { %8 = vsyncpa [#allocation3], 0  ;;  %s256_s0 = inlined_call_operand.vmem [shape: bf16[8,36], index: 0, kind: input, shape index: {}]   ;;  %s257_s1 = inlined_call_operand.vmem [shape: f32[8,1], index: 1, kind: input, shape index: {}]   ;;  %s258_s2 = inlined_call_operand.hbm [shape: bf16[36,128], index: 2, kind: input, shape index: {}]   ;;  %s259_s3 = inlined_call_operand.hbm [shape: f32[8,128], index: 3, kind: output, shape index: {}]  }
   0x1   :  { %9 = vsyncpa [#allocation4], 0  ;;  %s199_s12 = smov [#allocation2]   ;;  %s151_s16 = scalar_lea.hbm %s258_s2, 320 }
   0x2   :  { %s19_s13 = sshll.u32 %s199_s12, 4  ;;  %p152_p0 = scmp.ne.s32.totalorder %s258_s2, %s151_s16  ;;  %s20_s13 = int_to_ptr.vmem [resolvable:$true] %s19_s13 }
   0x3   :  { %p155_p1 = scmp.lt.u32.totalorder %s151_s16, %s258_s2 }
   0x5   :  { %p157_p2 = pnand %p155_p1, %p152_p0 }
   0x7   :  { %160 = shalt.err (!%p157_p2)
}
   0x8   :  { %s161_s21 = scalar_lea.vmem %s20_s13, 320  ;;  %p166_p4 = scmp.lt.s32.totalorder %s20_s13, %s20_s13 }
   0x9   :  { %p162_p3 = scmp.ne.s32.totalorder %s20_s13, %s161_s21  ;;  %p167_p5 = scmp.lt.s32.totalorder %s161_s21, %s161_s21 }
   0xb   :  { %p168_p6 = por %p167_p5, %p166_p4 }
   0xd   :  { %p169_p7 = pnand %p168_p6, %p162_p3 }
   0xf   :  { %172 = shalt.err (!%p169_p7)
}
  0x10   :  { %s200_s22 = smov 64   ;;  %s201_s23 = smov 4  }
  0x11   :  { %25 = dma.hbm_to_vmem [thread:$0]  %s258_s2, 320, %s20_s13, [#allocation3], %s200_s22, %s200_s22, %s201_s23  }
  0x12   :  { %195 = dma.done.wait [#allocation3], 320  }
  0x13   :  { %196 = vsyncadd [#allocation3], 4294966976  ;;  %v202_v0 = vmov 0.0   ;;  %vm203_vm0 = vmmov 0   ;;  %v204_v1 = vmov 0   ;;  %v148_v2 = vld [vmem:[#allocation2] sm:$0xff]  }
  0x14   :  { %130 = vmatprep.subr.bf16.mxu0 %v202_v0  ;;  %136 = vmatprep.mubr.msk.bf16.mxu0 %vm203_vm0, %v202_v0  ;;  %v149_v3 = vld [vmem:[#allocation2 + $0x8] sm:$0xff]   ;;  %v36_v4 = vld [vmem:[%s257_s1] sm:$0xff]  ;;  %v150_v5 = vld [vmem:[#allocation2 + $0x10] ss:$0 sps:$4 sm:$0x33]   ;;  %vm61_vm1 = vcmask 1041408  }
  0x15   :  { %147 = vset.pattern.permute.xlu0 %v204_v1  ;;  %131 = vmatpush3.bf16.msra.mxu0 %v148_v2  ;;  %v63_v6 = vsel %vm61_vm1, %v150_v5, 0  ;;  %v30_v7 = vld [vmem:[%s256_s0] sm:$0xf]  ;;  %vm57_vm2 = vcmask 293888   ;;  %s205_s29 = smov [#allocation5]  }
  0x16   :  { %132 = vmatprep.subr.bf16.mxu0 %v202_v0  ;;  %39 = vperm.xlu0 %147, %v36_v4   ;;  %s113_s30 = sshll.u32 %s205_s29, 4  ;;  %s114_s30 = int_to_ptr.vmem [resolvable:$true] %s113_s30 }
  0x17   :  { %s173_s1 = scalar_lea.vmem %s114_s30, 128  ;;  %p178_p9 = scmp.lt.s32.totalorder %s114_s30, %s114_s30 }
  0x18   :  { %p174_p8 = scmp.ne.s32.totalorder %s114_s30, %s173_s1  ;;  %p179_p10 = scmp.lt.s32.totalorder %s173_s1, %s173_s1 }
  0x19   :  { %133 = vmatpush3.bf16.msra.mxu0 %v149_v3 }
  0x1a   :  { %134 = vmatprep.subr.bf16.mxu0 %v202_v0  ;;  %p180_p11 = por %p179_p10, %p178_p9 }
  0x1c   :  { %p181_p12 = pnand %p180_p11, %p174_p8 }
  0x1d   :  { %135 = vmatpush3.bf16.msra.mxu0 %v63_v6 }
  0x20   :  { %137 = vmatmul.mubr.msk.bf16.vlgmr.msra.gmra.mrb[0].mxu0 %vm57_vm2, %v30_v7 }
  0x95   :  { %v40_v8 = vpop.permute.xlu0 %39 }
  0xf3   :  { %v99_v9 = vpop.f32.mrb[0].mxu0 }
  0xf4   :  { %v100_v10 = vadd.f32 %v99_v9, %v40_v8  ;;  %v138_v11 = vpop.f32.mrb[1].mxu0 }
  0xf5   :  { %v102_v12 = vpop.f32.mrb[2].mxu0 }
  0xf6   :  { %v105_v13 = vmax.f32 %v100_v10, 0.0  ;;  %v139_v14 = vpop.f32.mrb[3].mxu0 }
  0xf8   :  { %106 = vst [vmem:[#allocation5] sm:$0xff] %v105_v13 }
  0xf9   :  { %184 = shalt.err (!%p181_p12)
}
  0xfa   :  { %s185_s5 = scalar_lea.hbm %s259_s3, 128 }
  0xfb   :  { %p186_p13 = scmp.ne.s32.totalorder %s259_s3, %s185_s5  ;;  %p189_p0 = scmp.lt.u32.totalorder %s185_s5, %s259_s3 }
  0xfd   :  { %p191_p1 = pnand %p189_p0, %p186_p13 }
  0xff   :  { %194 = shalt.err (!%p191_p1)
}
 0x100   :  { %116 = dma.vmem_to_hbm [thread:$0]  %s114_s30, 128, %s259_s3, [#allocation4]  }
 0x101   :  { %197 = dma.done.wait [#allocation4], 128  }
 0x102   :  { %198 = vsyncadd [#allocation4], 4294967168 }
 0x103   :  { %120 = vsyncpa [#allocation3], 1 }
 0x104   :  { %121 = vsyncpa [#allocation4], 1 }

</bundles_post_ra>
